<compile_context>
chip_gen: v6e
topology: v6e:2x2x1
jax: 0.10.0
libtpu: 0.0.40
codegen_flags: <defaults>
</compile_context>

<pallas_src>
import functools
import math

import jax
import jax.numpy as jnp
from jax.experimental import pallas as pl
from jax.experimental.pallas import tpu as pltpu


def _prober_kernel(x_ref, w_ref, o_ref):
    # x_ref: (block_rows, K) packed activation tile; w_ref: (K, N) packed
    # block-diagonal weight (grid-resident).  f32 MXU accumulation regardless
    # of the streaming dtype.
    acc = jnp.dot(x_ref[...], w_ref[...], preferred_element_type=jnp.float32)
    # Exact sigmoid in f32: exp goes to the EUP, the divide is negligible for a
    # memory-bound kernel, and the form never produces NaN.
    o_ref[...] = (1.0 / (1.0 + jnp.exp(-acc))).astype(o_ref.dtype)


def _pack_factor(d_out):
    """Smallest p such that p * d_out is a multiple of 128 (lane-dense output)."""
    if d_out % 128 == 0:
        return 1
    return 128 // math.gcd(d_out, 128)


@functools.partial(jax.jit, static_argnames=("block_rows", "out_dtype"))
def single_linear_prober(x, w_t, *, block_rows=None, out_dtype=jnp.float32):
    """x: [B, D_in], w_t: [D_in, D_out] (PyTorch weight transposed).

    Returns sigmoid(x @ w_t) with dtype `out_dtype`.  Pass x in bf16 to halve
    the dominant HBM stream (f32 accumulation is kept inside the kernel).
    """
    B, D_in = x.shape
    D_in_w, D_out = w_t.shape
    assert D_in == D_in_w

    # ---- lane-dense block-diagonal repack -------------------------------
    pack = _pack_factor(D_out)
    B_pad = -(-B // pack) * pack
    if B_pad != B:
        x = jnp.pad(x, ((0, B_pad - B), (0, 0)))
    n_rows = B_pad // pack          # packed rows
    K = pack * D_in                 # packed contraction dim (256 for D_in=32)
    N = pack * D_out                # packed output lanes   (128 for D_out=16)

    x_packed = x.reshape(n_rows, K)                     # free row-major view
    # p copies of W_t on the diagonal; cast to the streaming dtype of x.
    w_packed = jnp.kron(jnp.eye(pack, dtype=w_t.dtype), w_t).astype(x.dtype)

    # ---- batch tiling ----------------------------------------------------
    # 2048 packed rows = 16384 original rows; x tile ~2 MiB (f32) / ~1 MiB
    # (bf16) per step -> per-step DMA dominates the fixed grid overhead while
    # the double-buffered footprint stays well under the 16 MiB v5e default.
    if block_rows is None:
        block_rows = 2048
    block_rows = min(block_rows, n_rows)
    if block_rows == n_rows and n_rows >= 16:
        # Split into >= 2 grid steps so both v7x TensorCores get work.
        block_rows = -(-n_rows // 2)
    if block_rows < n_rows:
        block_rows = (block_rows // 8) * 8      # sublane-aligned partial tile
        if block_rows < 8:
            block_rows = n_rows                 # too small to align -> full extent
    grid = (pl.cdiv(n_rows, block_rows),)

    # ---- advisory roofline hint (memory-bound custom call) ---------------
    bytes_accessed = (x_packed.size * x_packed.dtype.itemsize
                      + w_packed.size * w_packed.dtype.itemsize
                      + n_rows * N * jnp.dtype(out_dtype).itemsize)
    cost = pl.CostEstimate(
        flops=2 * n_rows * K * N,
        transcendentals=n_rows * N,
        bytes_accessed=bytes_accessed,
    )

    out_packed = pl.pallas_call(
        _prober_kernel,
        out_shape=jax.ShapeDtypeStruct((n_rows, N), out_dtype),
        grid_spec=pltpu.PrefetchScalarGridSpec(
            num_scalar_prefetch=0,
            grid=grid,
            in_specs=[
                pl.BlockSpec((block_rows, K), lambda i: (i, 0)),  # stream x over batch
                pl.BlockSpec((K, N), lambda i: (0, 0)),           # weight resident
            ],
            out_specs=pl.BlockSpec((block_rows, N), lambda i: (i, 0)),
        ),
        compiler_params=pltpu.CompilerParams(
            dimension_semantics=("parallel",),  # batch axis -> shard across TCs on v7x
        ),
        cost_estimate=cost,
    )(x_packed, w_packed)

    # Un-pack: (n_rows, p*D_out) row-major view is exactly (B_pad, D_out).
    return out_packed.reshape(B_pad, D_out)[:B]


if __name__ == "__main__":
    key = jax.random.PRNGKey(0)
    k_x, k_w, k_x2, k_x3 = jax.random.split(key, 4)

    # Shapes consistent with SingleLinearProber(input_dim=32, output_dim=16).
    D_in, D_out = 32, 16
    bound = 1.0 / (D_in ** 0.5)
    # PyTorch weight is [D_out, D_in]; the kernel takes it transposed.
    w = jax.random.uniform(k_w, (D_out, D_in), dtype=jnp.float32,
                           minval=-bound, maxval=bound)
    w_t = jnp.asarray(w.T)

    # 1) Small batch (single packed row).
    B = 8
    x = jax.random.normal(k_x, (B, D_in), dtype=jnp.float32)
    out = jax.block_until_ready(single_linear_prober(x, w_t))
    ref = jax.nn.sigmoid(x @ w_t)
    assert out.shape == (B, D_out) and out.dtype == jnp.float32
    assert jnp.allclose(out, ref, atol=1e-2, rtol=1e-2)

    # 2) Batch not a multiple of the pack factor (exercises pad + slice path).
    B2 = 20
    x2 = jax.random.normal(k_x2, (B2, D_in), dtype=jnp.float32)
    ref2 = jax.nn.sigmoid(x2 @ w_t)
    out2 = jax.block_until_ready(single_linear_prober(x2, w_t))
    assert out2.shape == (B2, D_out)
    assert jnp.allclose(out2, ref2, atol=1e-2, rtol=1e-2)

    # 3) Multi-step grid with ragged last tile (200 rows -> 25 packed rows, tile 8).
    B3 = 200
    x3 = jax.random.normal(k_x3, (B3, D_in), dtype=jnp.float32)
    ref3 = jax.nn.sigmoid(x3 @ w_t)
    out3 = jax.block_until_ready(single_linear_prober(x3, w_t, block_rows=8))
    assert out3.shape == (B3, D_out)
    assert jnp.allclose(out3, ref3, atol=1e-2, rtol=1e-2)

    # 4) bf16 streaming (caller supplies bf16 x; no wrapper-side cast) + bf16 out.
    out4 = jax.block_until_ready(
        single_linear_prober(x3.astype(jnp.bfloat16), w_t,
                             block_rows=8, out_dtype=jnp.bfloat16))
    assert out4.dtype == jnp.bfloat16
    assert jnp.allclose(out4.astype(jnp.float32), ref3, atol=3e-2, rtol=3e-2)

    print("KERNEL_OK")
</pallas_src>

<mosaic_0001>
module attributes {stable_mosaic.version = 11 : i64} {
  func.func @_prober_kernel(%arg0: i32, %arg1: memref<1x256xf32, #tpu.memory_space<vmem>>, %arg2: memref<256x128xf32, #tpu.memory_space<vmem>>, %arg3: memref<1x128xf32, #tpu.memory_space<vmem>>) attributes {dimension_semantics = [#tpu.dimension_semantics<parallel>], iteration_bounds = array<i64: 1>, scalar_prefetch = 0 : i64, scratch_operands = 0 : i64, tpu.core_type = #tpu.core_type<tc>, window_params = [{transform_indices = @transform_0, window_bounds = array<i64: 1, 256>}, {pipeline_mode = #tpu.pipeline_mode<synchronous>, transform_indices = @transform_1, window_bounds = array<i64: 256, 128>}, {transform_indices = @transform_2, window_bounds = array<i64: 1, 128>}]} {
    %c0 = arith.constant 0 : index
    %c0_0 = arith.constant 0 : index
    %0 = vector.load %arg1[%c0, %c0_0] : memref<1x256xf32, #tpu.memory_space<vmem>>, vector<1x256xf32>
    %c0_1 = arith.constant 0 : index
    %c0_2 = arith.constant 0 : index
    %1 = vector.load %arg2[%c0_1, %c0_2] : memref<256x128xf32, #tpu.memory_space<vmem>>, vector<256x128xf32>
    %cst = arith.constant dense<0.000000e+00> : vector<1x128xf32>
    %2 = tpu.matmul %0, %1, %cst {dimension_numbers = #tpu.dot_dimension_numbers<[1], [0], [0], [1], [0, 0, 1, 1], [], []>} : vector<1x256xf32>, vector<256x128xf32>, vector<1x128xf32> -> vector<1x128xf32>
    %cst_3 = arith.constant 0.000000e+00 : f32
    %3 = vector.broadcast %cst_3 : f32 to vector<1x128xf32>
    %4 = arith.subf %3, %2 : vector<1x128xf32>
    %5 = math.exp %4 : vector<1x128xf32>
    %cst_4 = arith.constant 1.000000e+00 : f32
    %6 = vector.broadcast %cst_4 : f32 to vector<1x128xf32>
    %7 = arith.addf %6, %5 : vector<1x128xf32>
    %cst_5 = arith.constant 1.000000e+00 : f32
    %8 = vector.broadcast %cst_5 : f32 to vector<1x128xf32>
    %9 = arith.divf %8, %7 : vector<1x128xf32>
    %c0_6 = arith.constant 0 : index
    %c0_7 = arith.constant 0 : index
    %10 = vector.load %arg3[%c0_6, %c0_7] : memref<1x128xf32, #tpu.memory_space<vmem>>, vector<1x128xf32>
    tpu.vector_store %arg3[%c0_6, %c0_7], %9 {strides = array<i32>} : memref<1x128xf32, #tpu.memory_space<vmem>>, vector<1x128xf32>,
    return
  }
  func.func @transform_0(%arg0: i32) -> (i32, i32) {
    %c0_i32 = arith.constant 0 : i32
    %c0_i32_0 = arith.constant 0 : i32
    return %arg0, %c0_i32 : i32, i32
  }
  func.func @transform_1(%arg0: i32) -> (i32, i32) {
    %c0_i32 = arith.constant 0 : i32
    %c0_i32_0 = arith.constant 0 : i32
    %c0_i32_1 = arith.constant 0 : i32
    return %c0_i32, %c0_i32_0 : i32, i32
  }
  func.func @transform_2(%arg0: i32) -> (i32, i32) {
    %c0_i32 = arith.constant 0 : i32
    %c0_i32_0 = arith.constant 0 : i32
    return %arg0, %c0_i32 : i32, i32
  }
}

</mosaic_0001>

<bundles_post_ra>
// kernel: single_linear_prober.1
= control target key start
LH: loop header
LB: loop body
LE: loop exit
PB: predicated region body
PF: predicated region fallthrough
CT: control target
= control target key end

     0   :  { %v45_v0 = vlaneseq  ;;  %s292_s1 = inlined_call_operand.vmem [shape: f32[256,128], index: 1, kind: input, shape index: {}]   ;;  %s293_s0 = inlined_call_operand.vmem [shape: f32[1,256], index: 0, kind: input, shape index: {}]   ;;  %s294_s2 = inlined_call_operand.vmem [shape: f32[1,128], index: 2, kind: output, shape index: {}]  }
   0x1   :  { %v43_v1 = vld [vmem:[%s292_s1 + $0xf8] sm:$0xff]  ;;  %v42_v3 = vld [vmem:[%s292_s1 + $0xf0] sm:$0xff]  ;;  %v41_v5 = vld [vmem:[%s292_s1 + $0xe8] sm:$0xff] }
   0x2   :  { %v27_v2 = vld [vmem:[%s292_s1 + $0x78] sm:$0xff]  ;;  %136 = vmatprep.subr.mxu0 %v43_v1  ;;  %v26_v4 = vld [vmem:[%s292_s1 + $0x70] sm:$0xff]  ;;  %v25_v6 = vld [vmem:[%s292_s1 + $0x68] sm:$0xff]  ;;  %v46_v7 = vshrl.u32 %v45_v0, 7 }
   0x3   :  { %137 = vmatpush3.msra.mxu0 %v27_v2  ;;  %v40_v8 = vld [vmem:[%s292_s1 + $0xe0] sm:$0xff]  ;;  %v39_v10 = vld [vmem:[%s292_s1 + $0xd8] sm:$0xff]  ;;  %v38_v13 = vld [vmem:[%s292_s1 + $0xd0] sm:$0xff] }
   0x4   :  { %138 = vmatprep.subr.mxu0 %v42_v3  ;;  %v24_v9 = vld [vmem:[%s292_s1 + $0x60] sm:$0xff]  ;;  %v23_v11 = vld [vmem:[%s292_s1 + $0x58] sm:$0xff]  ;;  %v51_v12 = vsub.s32 1, %v46_v7  ;;  %v22_v14 = vld [vmem:[%s292_s1 + $0x50] sm:$0xff]  ;;  %v47_v33 = vsub.s32 0, %v46_v7 }
   0x5   :  { %139 = vmatpush3.msra.mxu0 %v26_v4  ;;  %v37_v15 = vld [vmem:[%s292_s1 + $0xc8] sm:$0xff]  ;;  %v11_v16 = vld [vmem:[%s293_s0] sm:$0x3]  ;;  %v35_v21 = vld [vmem:[%s292_s1 + $0xb8] sm:$0xff] }
   0x6   :  { %140 = vmatprep.subr.mxu0 %v41_v5  ;;  %v21_v17 = vld [vmem:[%s292_s1 + $0x48] sm:$0xff]  ;;  %v52_v18 = vrot.slane %v11_v16, %v51_v12  ;;  %v36_v19 = vld [vmem:[%s292_s1 + $0xc0] sm:$0xff]  ;;  %v19_v22 = vld [vmem:[%s292_s1 + $0x38] sm:$0xff]  ;;  %v48_v38 = vrot.slane %v11_v16, %v47_v33 }
   0x7   :  { %141 = vmatpush3.msra.mxu0 %v25_v6  ;;  %v20_v20 = vld [vmem:[%s292_s1 + $0x40] sm:$0xff]  ;;  %v34_v23 = vld [vmem:[%s292_s1 + $0xb0] sm:$0xff]  ;;  %v33_v25 = vld [vmem:[%s292_s1 + $0xa8] sm:$0xff] }
   0x8   :  { %142 = vmatprep.subr.mxu0 %v40_v8  ;;  %119 = vmatprep.mubr.f32.mxu0 %v52_v18  ;;  %v18_v24 = vld [vmem:[%s292_s1 + $0x30] sm:$0xff]  ;;  %v17_v26 = vld [vmem:[%s292_s1 + $0x28] sm:$0xff]  ;;  %v32_v27 = vld [vmem:[%s292_s1 + $0xa0] sm:$0xff] }
   0x9   :  { %143 = vmatpush3.msra.mxu0 %v24_v9  ;;  %v16_v28 = vld [vmem:[%s292_s1 + $0x20] sm:$0xff]  ;;  %v31_v29 = vld [vmem:[%s292_s1 + $0x98] sm:$0xff]  ;;  %v30_v31 = vld [vmem:[%s292_s1 + $0x90] sm:$0xff] }
   0xa   :  { %144 = vmatprep.subr.mxu0 %v39_v10  ;;  %v15_v30 = vld [vmem:[%s292_s1 + $0x18] sm:$0xff]  ;;  %v14_v32 = vld [vmem:[%s292_s1 + $0x10] sm:$0xff]  ;;  %v29_v34 = vld [vmem:[%s292_s1 + $0x88] sm:$0xff] }
   0xb   :  { %145 = vmatpush3.msra.mxu0 %v23_v11  ;;  %v13_v35 = vld [vmem:[%s292_s1 + $0x8] sm:$0xff]  ;;  %v28_v36 = vld [vmem:[%s292_s1 + $0x80] sm:$0xff] }
   0xc   :  { %146 = vmatprep.subr.mxu0 %v38_v13  ;;  %v12_v37 = vld [vmem:[%s292_s1] sm:$0xff] }
   0xd   :  { %147 = vmatpush3.msra.mxu0 %v22_v14 }
   0xe   :  { %148 = vmatprep.subr.mxu0 %v37_v15 }
   0xf   :  { %149 = vmatpush3.msra.mxu0 %v21_v17 }
  0x10   :  { %150 = vmatprep.subr.mxu0 %v36_v19 }
  0x11   :  { %151 = vmatpush3.msra.mxu0 %v20_v20 }
  0x12   :  { %152 = vmatprep.subr.mxu0 %v35_v21 }
  0x13   :  { %153 = vmatpush3.msra.mxu0 %v19_v22 }
  0x14   :  { %154 = vmatprep.subr.mxu0 %v34_v23 }
  0x15   :  { %155 = vmatpush3.msra.mxu0 %v18_v24 }
  0x16   :  { %156 = vmatprep.subr.mxu0 %v33_v25 }
  0x17   :  { %157 = vmatpush3.msra.mxu0 %v17_v26 }
  0x18   :  { %158 = vmatprep.subr.mxu0 %v32_v27 }
  0x19   :  { %159 = vmatpush3.msra.mxu0 %v16_v28 }
  0x1a   :  { %160 = vmatprep.subr.mxu0 %v31_v29 }
  0x1b   :  { %161 = vmatpush3.msra.mxu0 %v15_v30 }
  0x1c   :  { %162 = vmatprep.subr.mxu0 %v30_v31 }
  0x1d   :  { %163 = vmatpush3.msra.mxu0 %v14_v32 }
  0x1e   :  { %164 = vmatprep.subr.mxu0 %v29_v34 }
  0x1f   :  { %165 = vmatpush3.msra.mxu0 %v13_v35 }
  0x20   :  { %166 = vmatprep.subr.mxu0 %v28_v36 }
  0x21   :  { %167 = vmatpush3.msra.mxu0 %v12_v37 }
  0x22   :  { %120 = vmatmul.mubr.f32.vlgmr.msra.gmra.mxu0 %v48_v38 }
  0xe2   :  { %v168_v39 = vpop.f32.mrf.mxu0 }
  0xe4   :  { %v169_v40 = vpop.f32.mrf.mxu0 }
  0xe5   :  { %v170_v41 = vadd.f32 %v169_v40, %v168_v39 }
  0xe7   :  { %v125_v42 = vsub.f32 0.0, %v170_v41 }
  0xe9   :  { %v126_v43 = vmul.f32 1.442695, %v125_v42 }
  0xeb   :  { %171 = vpow2.f32 %v126_v43 }
  0xf8   :  { %v172_v44 = vpop.eup %171 }
  0xf9   :  { %v128_v45 = vadd.f32 1.0, %v172_v44 }
  0xfb   :  { %173 = vrcp.f32 %v128_v45 }
 0x108   :  { %v174_v46 = vpop.eup %173 }
 0x109   :  { %131 = vst [vmem:[%s294_s2] sm:$0x1] %v174_v46 }

</bundles_post_ra>
